<compile_context>
chip_gen: v7x
topology: tpu7x:2x2x1
jax: 0.10.0
libtpu: 0.0.40
codegen_flags: <defaults>
</compile_context>

<pallas_src>
import functools

import jax
import jax.numpy as jnp
import numpy as np
from jax.experimental import pallas as pl
from jax.experimental.pallas import tpu as pltpu

# ---------------------------------------------------------------------------
# Problem sizes (small, consistent with the module: num_hiddens % num_heads == 0)
# ---------------------------------------------------------------------------
SEQ = 8          # S
BATCH = 2        # N
HIDDEN = 64      # E (num_hiddens, also norm_shape)
NUM_HEADS = 4    # H
HEAD_DIM = HIDDEN // NUM_HEADS
LN_EPS = 1e-5


# ---------------------------------------------------------------------------
# Kernel: whole block (all batch elements) in one invocation, lane-dense layout
# ---------------------------------------------------------------------------
def _attn_addnorm_kernel(x_ref, wqkv_ref, bqkv_ref, wo_ref, vec_ref, avg_ref,
                         out_ref, *, n, num_heads, head_dim, hidden):
    x = x_ref[...]                                              # (S, n*E) f32
    s_len = x.shape[0]

    # --- fused QKV projection: one MXU push ---------------------------------
    # Weights arrive as bf16 (half the DMA bytes); upcast so the matmul and
    # everything downstream stays f32.
    wqkv = wqkv_ref[...].astype(jnp.float32)                    # (n*E, n*3E)
    qkv = jnp.dot(x, wqkv, preferred_element_type=jnp.float32) + bqkv_ref[...]

    scale = head_dim ** -0.5

    # --- per-(batch, head) scaled dot-product attention ----------------------
    # q@k^T via dot_general contracting on dim 1 (no explicit transpose);
    # head outputs stay in registers and are joined with one concatenate.
    heads = []
    for b in range(n):
        base = b * 3 * hidden
        for h in range(num_heads):
            q_lo = base + h * head_dim
            k_lo = base + hidden + h * head_dim
            v_lo = base + 2 * hidden + h * head_dim
            qh = qkv[:, q_lo:q_lo + head_dim] * scale           # (S, Dh)
            kh = qkv[:, k_lo:k_lo + head_dim]                   # (S, Dh)
            vh = qkv[:, v_lo:v_lo + head_dim]                   # (S, Dh)
            s = jax.lax.dot_general(qh, kh, (((1,), (1,)), ((), ())),
                                    preferred_element_type=jnp.float32)  # (S, S)
            s = s - jnp.max(s, axis=-1, keepdims=True)
            p = jnp.exp(s)
            p = p / jnp.sum(p, axis=-1, keepdims=True)          # exact softmax
            heads.append(jnp.dot(p, vh, preferred_element_type=jnp.float32))
    attn = jnp.concatenate(heads, axis=1)                       # (S, n*E), in regs

    # --- output projection (block-diag Wo) + residual ------------------------
    vec = vec_ref[...]                                          # (3, n*E): bo, gamma, beta
    wo = wo_ref[...].astype(jnp.float32)
    o = jnp.dot(attn, wo, preferred_element_type=jnp.float32) + vec[0:1, :]
    y = o + x                                                   # dropout = identity (eval)

    # --- per-batch-element LayerNorm over E -----------------------------------
    # avg[i, j] = 1/E iff columns i, j belong to the same batch element; one
    # fused [y; y*y] @ avg matmul gives mean and E[y^2] in a single MXU push.
    avg = avg_ref[...].astype(jnp.float32)                      # (n*E, n*E)
    yy = jnp.concatenate([y, y * y], axis=0)                    # (2S, n*E)
    stats = jnp.dot(yy, avg, preferred_element_type=jnp.float32)
    mean = stats[:s_len, :]
    var = stats[s_len:, :] - mean * mean                        # E[y^2] - mean^2
    y_norm = (y - mean) * jax.lax.rsqrt(var + LN_EPS)

    out_ref[...] = (y_norm * vec[1:2, :] + vec[2:3, :]).astype(out_ref.dtype)


# ---------------------------------------------------------------------------
# Jitted wrapper: reshape + pallas_call + reshape (no per-call weight fusion)
# ---------------------------------------------------------------------------
@jax.jit
def self_attention_block_pallas(x_sbe, fused):
    """x_sbe: (S, N, E) float32 (PyTorch MultiheadAttention layout). Returns (S, N, E)."""
    S, N, E = x_sbe.shape
    NE = N * E
    x2 = x_sbe.reshape(S, NE)            # contiguous reshape -> lane-dense (8, 128)

    kernel = functools.partial(_attn_addnorm_kernel, n=N, num_heads=NUM_HEADS,
                               head_dim=E // NUM_HEADS, hidden=E)
    full = lambda i: (0, 0)

    out2 = pl.pallas_call(
        kernel,
        out_shape=jax.ShapeDtypeStruct((S, NE), x2.dtype),
        grid=(1,),
        in_specs=[
            pl.BlockSpec((S, NE), full),          # x (lane-dense)
            pl.BlockSpec((NE, 3 * NE), full),     # block-diag fused QKV weight (bf16)
            pl.BlockSpec((1, 3 * NE), full),      # fused QKV bias (f32)
            pl.BlockSpec((NE, NE), full),         # block-diag output-proj weight (bf16)
            pl.BlockSpec((3, NE), full),          # [bo; gamma; beta] (f32)
            pl.BlockSpec((NE, NE), full),         # LayerNorm block-averaging matrix (bf16)
        ],
        out_specs=pl.BlockSpec((S, NE), full),
        compiler_params=pltpu.CompilerParams(dimension_semantics=("arbitrary",)),
    )(x2, fused["wqkv"], fused["bqkv"], fused["wo"], fused["vec"], fused["avg"])

    return out2.reshape(S, N, E)


# ---------------------------------------------------------------------------
# Parameters
# ---------------------------------------------------------------------------
def _round_bf16(a):
    """Round f32 values through bf16 so bf16 kernel weights are lossless copies."""
    return jnp.asarray(a, jnp.bfloat16).astype(jnp.float32)


def make_params(key, E):
    """Deterministic synthetic parameters (shapes match nn.MultiheadAttention/LayerNorm).

    Weight matrices are rounded through bf16 once, so the bf16 copies handed to
    the kernel represent exactly the same values the f32 reference uses.
    """
    ks = jax.random.split(key, 5)
    scale = 1.0 / np.sqrt(E)
    # in_proj_weight: (3E, E) in torch; store the per-chunk transposes (E, E)
    in_proj_w = jax.random.uniform(ks[0], (3 * E, E), jnp.float32, -scale, scale)
    wq_t = _round_bf16(in_proj_w[0 * E:1 * E].T)
    wk_t = _round_bf16(in_proj_w[1 * E:2 * E].T)
    wv_t = _round_bf16(in_proj_w[2 * E:3 * E].T)
    in_proj_b = jax.random.uniform(ks[1], (3 * E,), jnp.float32, -scale, scale)
    bq = in_proj_b[0 * E:1 * E].reshape(1, E)
    bk = in_proj_b[1 * E:2 * E].reshape(1, E)
    bv = in_proj_b[2 * E:3 * E].reshape(1, E)
    wo_t = _round_bf16(jax.random.uniform(ks[2], (E, E), jnp.float32, -scale, scale).T)
    bo = jax.random.uniform(ks[3], (E,), jnp.float32, -scale, scale).reshape(1, E)
    gamma = jnp.ones((1, E), jnp.float32)
    beta = jnp.zeros((1, E), jnp.float32)
    return dict(wq_t=wq_t, wk_t=wk_t, wv_t=wv_t, bq=bq, bk=bk, bv=bv,
                wo_t=wo_t, bo=bo, gamma=gamma, beta=beta)


def prepare_fused_params(params, n):
    """One-time host-side weight fusion (hoisted out of the jitted call).

    Block-diagonal-over-batch weights scale as N^2; fine at N=2 (see review).
    """
    p = {k: np.asarray(v, np.float32) for k, v in params.items()}
    E = p["wq_t"].shape[0]
    eye_n = np.eye(n, dtype=np.float32)

    wqkv_t = np.concatenate([p["wq_t"], p["wk_t"], p["wv_t"]], axis=1)   # (E, 3E)
    wqkv_blk = np.kron(eye_n, wqkv_t)                                    # (NE, 3NE)
    bqkv = np.concatenate([p["bq"], p["bk"], p["bv"]], axis=1)           # (1, 3E)
    bqkv_blk = np.tile(bqkv, (1, n))                                     # (1, 3NE)
    wo_blk = np.kron(eye_n, p["wo_t"])                                   # (NE, NE)
    vecs = np.concatenate([np.tile(p["bo"], (1, n)),
                           np.tile(p["gamma"], (1, n)),
                           np.tile(p["beta"], (1, n))], axis=0)          # (3, NE)
    # LayerNorm block-averaging matrix (entries 0 or 1/E; exact in bf16 for E=64)
    avg = np.kron(eye_n, np.full((E, E), 1.0 / E, np.float32))           # (NE, NE)

    return dict(
        wqkv=jnp.asarray(wqkv_blk, jnp.bfloat16),
        bqkv=jnp.asarray(bqkv_blk, jnp.float32),
        wo=jnp.asarray(wo_blk, jnp.bfloat16),
        vec=jnp.asarray(vecs, jnp.float32),
        avg=jnp.asarray(avg, jnp.bfloat16),
    )


# ---------------------------------------------------------------------------
# Pure-JAX reference (torch.nn.MultiheadAttention + AddNorm, eval mode)
# ---------------------------------------------------------------------------
def reference_jax(x_sbe, params):
    S, N, E = x_sbe.shape
    x = jnp.transpose(x_sbe, (1, 0, 2))            # (N, S, E)
    q = x @ params["wq_t"] + params["bq"]
    k = x @ params["wk_t"] + params["bk"]
    v = x @ params["wv_t"] + params["bv"]
    q = q * (1.0 / np.sqrt(HEAD_DIM))
    qh = q.reshape(N, S, NUM_HEADS, HEAD_DIM).transpose(0, 2, 1, 3)
    kh = k.reshape(N, S, NUM_HEADS, HEAD_DIM).transpose(0, 2, 1, 3)
    vh = v.reshape(N, S, NUM_HEADS, HEAD_DIM).transpose(0, 2, 1, 3)
    s = jnp.einsum("nhqd,nhkd->nhqk", qh, kh)
    p = jax.nn.softmax(s, axis=-1)
    o = jnp.einsum("nhqk,nhkd->nhqd", p, vh)
    o = o.transpose(0, 2, 1, 3).reshape(N, S, E)
    o = o @ params["wo_t"] + params["bo"]
    y = o + x
    mean = jnp.mean(y, axis=-1, keepdims=True)
    var = jnp.mean((y - mean) ** 2, axis=-1, keepdims=True)
    y = (y - mean) / jnp.sqrt(var + LN_EPS) * params["gamma"] + params["beta"]
    return jnp.transpose(y, (1, 0, 2))


if __name__ == "__main__":
    key = jax.random.PRNGKey(0)
    kx, kp = jax.random.split(key)
    # X in PyTorch MultiheadAttention layout: (seq, batch, embed)
    x = jax.random.normal(kx, (SEQ, BATCH, HIDDEN), jnp.float32)
    params = make_params(kp, HIDDEN)
    fused = prepare_fused_params(params, BATCH)     # one-time, outside the jitted call

    out = self_attention_block_pallas(x, fused)
    out = jax.block_until_ready(out)

    ref = jax.block_until_ready(reference_jax(x, params))
    assert out.shape == (SEQ, BATCH, HIDDEN)
    # The kernel itself is exact (approx reciprocal removed; bf16 weight copies are
    # lossless).  The tolerance headroom covers the XLA reference's default TPU
    # matmul precision (operand truncation) vs. the kernel's full-f32 MXU path.
    np.testing.assert_allclose(np.asarray(out), np.asarray(ref), atol=2e-3, rtol=2e-3)

    print("KERNEL_OK")
</pallas_src>

<mosaic_0001>
module attributes {stable_mosaic.version = 11 : i64} {
  func.func @_attn_addnorm_kernel(%arg0: i32, %arg1: memref<8x128xf32, #tpu.memory_space<vmem>>, %arg2: memref<128x384xbf16, #tpu.memory_space<vmem>>, %arg3: memref<1x384xf32, #tpu.memory_space<vmem>>, %arg4: memref<128x128xbf16, #tpu.memory_space<vmem>>, %arg5: memref<3x128xf32, #tpu.memory_space<vmem>>, %arg6: memref<128x128xbf16, #tpu.memory_space<vmem>>, %arg7: memref<8x128xf32, #tpu.memory_space<vmem>>) attributes {dimension_semantics = [#tpu.dimension_semantics<arbitrary>], iteration_bounds = array<i64: 1>, scalar_prefetch = 0 : i64, scratch_operands = 0 : i64, tpu.core_type = #tpu.core_type<tc>, window_params = [{pipeline_mode = #tpu.pipeline_mode<synchronous>, transform_indices = @transform_0, window_bounds = array<i64: 8, 128>}, {pipeline_mode = #tpu.pipeline_mode<synchronous>, transform_indices = @transform_1, window_bounds = array<i64: 128, 384>}, {pipeline_mode = #tpu.pipeline_mode<synchronous>, transform_indices = @transform_2, window_bounds = array<i64: 1, 384>}, {pipeline_mode = #tpu.pipeline_mode<synchronous>, transform_indices = @transform_3, window_bounds = array<i64: 128, 128>}, {pipeline_mode = #tpu.pipeline_mode<synchronous>, transform_indices = @transform_4, window_bounds = array<i64: 3, 128>}, {pipeline_mode = #tpu.pipeline_mode<synchronous>, transform_indices = @transform_5, window_bounds = array<i64: 128, 128>}, {pipeline_mode = #tpu.pipeline_mode<synchronous>, transform_indices = @transform_6, window_bounds = array<i64: 8, 128>}]} {
    %c0 = arith.constant 0 : index
    %c0_0 = arith.constant 0 : index
    %0 = vector.load %arg1[%c0, %c0_0] : memref<8x128xf32, #tpu.memory_space<vmem>>, vector<8x128xf32>
    %c0_1 = arith.constant 0 : index
    %c0_2 = arith.constant 0 : index
    %1 = vector.load %arg2[%c0_1, %c0_2] : memref<128x384xbf16, #tpu.memory_space<vmem>>, vector<128x384xbf16>
    %2 = arith.extf %1 : vector<128x384xbf16> to vector<128x384xf32>
    %cst = arith.constant dense<0.000000e+00> : vector<8x384xf32>
    %3 = tpu.matmul %0, %2, %cst {dimension_numbers = #tpu.dot_dimension_numbers<[1], [0], [0], [1], [0, 0, 1, 1], [], []>} : vector<8x128xf32>, vector<128x384xf32>, vector<8x384xf32> -> vector<8x384xf32>
    %c0_3 = arith.constant 0 : index
    %c0_4 = arith.constant 0 : index
    %4 = vector.load %arg3[%c0_3, %c0_4] : memref<1x384xf32, #tpu.memory_space<vmem>>, vector<1x384xf32>
    %5 = vector.broadcast %4 : vector<1x384xf32> to vector<8x384xf32>
    %6 = arith.addf %3, %5 : vector<8x384xf32>
    %7 = vector.extract_strided_slice %6 {offsets = [0, 0], sizes = [8, 16], strides = [1, 1]} : vector<8x384xf32> to vector<8x16xf32>
    %cst_5 = arith.constant 2.500000e-01 : f32
    %8 = vector.broadcast %cst_5 : f32 to vector<8x16xf32>
    %9 = arith.mulf %7, %8 : vector<8x16xf32>
    %10 = vector.extract_strided_slice %6 {offsets = [0, 64], sizes = [8, 16], strides = [1, 1]} : vector<8x384xf32> to vector<8x16xf32>
    %11 = vector.extract_strided_slice %6 {offsets = [0, 128], sizes = [8, 16], strides = [1, 1]} : vector<8x384xf32> to vector<8x16xf32>
    %cst_6 = arith.constant dense<0.000000e+00> : vector<8x8xf32>
    %12 = tpu.matmul %9, %10, %cst_6 {dimension_numbers = #tpu.dot_dimension_numbers<[1], [1], [0], [0], [0, 0, 1, 0], [], []>} : vector<8x16xf32>, vector<8x16xf32>, vector<8x8xf32> -> vector<8x8xf32>
    %cst_7 = arith.constant dense<0xFF800000> : vector<8xf32>
    %13 = vector.multi_reduction <maximumf>, %12, %cst_7 [1] : vector<8x8xf32> to vector<8xf32>
    %14 = vector.shape_cast %13 : vector<8xf32> to vector<8x1xf32>
    %15 = vector.broadcast %14 : vector<8x1xf32> to vector<8x8xf32>
    %16 = arith.subf %12, %15 : vector<8x8xf32>
    %17 = math.exp %16 : vector<8x8xf32>
    %cst_8 = arith.constant dense<0.000000e+00> : vector<8xf32>
    %18 = vector.multi_reduction <add>, %17, %cst_8 [1] : vector<8x8xf32> to vector<8xf32>
    %19 = vector.shape_cast %18 : vector<8xf32> to vector<8x1xf32>
    %20 = vector.broadcast %19 : vector<8x1xf32> to vector<8x8xf32>
    %21 = arith.divf %17, %20 : vector<8x8xf32>
    %cst_9 = arith.constant dense<0.000000e+00> : vector<8x16xf32>
    %22 = tpu.matmul %21, %11, %cst_9 {dimension_numbers = #tpu.dot_dimension_numbers<[1], [0], [0], [1], [0, 0, 1, 1], [], []>} : vector<8x8xf32>, vector<8x16xf32>, vector<8x16xf32> -> vector<8x16xf32>
    %23 = vector.extract_strided_slice %6 {offsets = [0, 16], sizes = [8, 16], strides = [1, 1]} : vector<8x384xf32> to vector<8x16xf32>
    %cst_10 = arith.constant 2.500000e-01 : f32
    %24 = vector.broadcast %cst_10 : f32 to vector<8x16xf32>
    %25 = arith.mulf %23, %24 : vector<8x16xf32>
    %26 = vector.extract_strided_slice %6 {offsets = [0, 80], sizes = [8, 16], strides = [1, 1]} : vector<8x384xf32> to vector<8x16xf32>
    %27 = vector.extract_strided_slice %6 {offsets = [0, 144], sizes = [8, 16], strides = [1, 1]} : vector<8x384xf32> to vector<8x16xf32>
    %cst_11 = arith.constant dense<0.000000e+00> : vector<8x8xf32>
    %28 = tpu.matmul %25, %26, %cst_11 {dimension_numbers = #tpu.dot_dimension_numbers<[1], [1], [0], [0], [0, 0, 1, 0], [], []>} : vector<8x16xf32>, vector<8x16xf32>, vector<8x8xf32> -> vector<8x8xf32>
    %cst_12 = arith.constant dense<0xFF800000> : vector<8xf32>
    %29 = vector.multi_reduction <maximumf>, %28, %cst_12 [1] : vector<8x8xf32> to vector<8xf32>
    %30 = vector.shape_cast %29 : vector<8xf32> to vector<8x1xf32>
    %31 = vector.broadcast %30 : vector<8x1xf32> to vector<8x8xf32>
    %32 = arith.subf %28, %31 : vector<8x8xf32>
    %33 = math.exp %32 : vector<8x8xf32>
    %cst_13 = arith.constant dense<0.000000e+00> : vector<8xf32>
    %34 = vector.multi_reduction <add>, %33, %cst_13 [1] : vector<8x8xf32> to vector<8xf32>
    %35 = vector.shape_cast %34 : vector<8xf32> to vector<8x1xf32>
    %36 = vector.broadcast %35 : vector<8x1xf32> to vector<8x8xf32>
    %37 = arith.divf %33, %36 : vector<8x8xf32>
    %cst_14 = arith.constant dense<0.000000e+00> : vector<8x16xf32>
    %38 = tpu.matmul %37, %27, %cst_14 {dimension_numbers = #tpu.dot_dimension_numbers<[1], [0], [0], [1], [0, 0, 1, 1], [], []>} : vector<8x8xf32>, vector<8x16xf32>, vector<8x16xf32> -> vector<8x16xf32>
    %39 = vector.extract_strided_slice %6 {offsets = [0, 32], sizes = [8, 16], strides = [1, 1]} : vector<8x384xf32> to vector<8x16xf32>
    %cst_15 = arith.constant 2.500000e-01 : f32
    %40 = vector.broadcast %cst_15 : f32 to vector<8x16xf32>
    %41 = arith.mulf %39, %40 : vector<8x16xf32>
    %42 = vector.extract_strided_slice %6 {offsets = [0, 96], sizes = [8, 16], strides = [1, 1]} : vector<8x384xf32> to vector<8x16xf32>
    %43 = vector.extract_strided_slice %6 {offsets = [0, 160], sizes = [8, 16], strides = [1, 1]} : vector<8x384xf32> to vector<8x16xf32>
    %cst_16 = arith.constant dense<0.000000e+00> : vector<8x8xf32>
    %44 = tpu.matmul %41, %42, %cst_16 {dimension_numbers = #tpu.dot_dimension_numbers<[1], [1], [0], [0], [0, 0, 1, 0], [], []>} : vector<8x16xf32>, vector<8x16xf32>, vector<8x8xf32> -> vector<8x8xf32>
    %cst_17 = arith.constant dense<0xFF800000> : vector<8xf32>
    %45 = vector.multi_reduction <maximumf>, %44, %cst_17 [1] : vector<8x8xf32> to vector<8xf32>
    %46 = vector.shape_cast %45 : vector<8xf32> to vector<8x1xf32>
    %47 = vector.broadcast %46 : vector<8x1xf32> to vector<8x8xf32>
    %48 = arith.subf %44, %47 : vector<8x8xf32>
    %49 = math.exp %48 : vector<8x8xf32>
    %cst_18 = arith.constant dense<0.000000e+00> : vector<8xf32>
    %50 = vector.multi_reduction <add>, %49, %cst_18 [1] : vector<8x8xf32> to vector<8xf32>
    %51 = vector.shape_cast %50 : vector<8xf32> to vector<8x1xf32>
    %52 = vector.broadcast %51 : vector<8x1xf32> to vector<8x8xf32>
    %53 = arith.divf %49, %52 : vector<8x8xf32>
    %cst_19 = arith.constant dense<0.000000e+00> : vector<8x16xf32>
    %54 = tpu.matmul %53, %43, %cst_19 {dimension_numbers = #tpu.dot_dimension_numbers<[1], [0], [0], [1], [0, 0, 1, 1], [], []>} : vector<8x8xf32>, vector<8x16xf32>, vector<8x16xf32> -> vector<8x16xf32>
    %55 = vector.extract_strided_slice %6 {offsets = [0, 48], sizes = [8, 16], strides = [1, 1]} : vector<8x384xf32> to vector<8x16xf32>
    %cst_20 = arith.constant 2.500000e-01 : f32
    %56 = vector.broadcast %cst_20 : f32 to vector<8x16xf32>
    %57 = arith.mulf %55, %56 : vector<8x16xf32>
    %58 = vector.extract_strided_slice %6 {offsets = [0, 112], sizes = [8, 16], strides = [1, 1]} : vector<8x384xf32> to vector<8x16xf32>
    %59 = vector.extract_strided_slice %6 {offsets = [0, 176], sizes = [8, 16], strides = [1, 1]} : vector<8x384xf32> to vector<8x16xf32>
    %cst_21 = arith.constant dense<0.000000e+00> : vector<8x8xf32>
    %60 = tpu.matmul %57, %58, %cst_21 {dimension_numbers = #tpu.dot_dimension_numbers<[1], [1], [0], [0], [0, 0, 1, 0], [], []>} : vector<8x16xf32>, vector<8x16xf32>, vector<8x8xf32> -> vector<8x8xf32>
    %cst_22 = arith.constant dense<0xFF800000> : vector<8xf32>
    %61 = vector.multi_reduction <maximumf>, %60, %cst_22 [1] : vector<8x8xf32> to vector<8xf32>
    %62 = vector.shape_cast %61 : vector<8xf32> to vector<8x1xf32>
    %63 = vector.broadcast %62 : vector<8x1xf32> to vector<8x8xf32>
    %64 = arith.subf %60, %63 : vector<8x8xf32>
    %65 = math.exp %64 : vector<8x8xf32>
    %cst_23 = arith.constant dense<0.000000e+00> : vector<8xf32>
    %66 = vector.multi_reduction <add>, %65, %cst_23 [1] : vector<8x8xf32> to vector<8xf32>
    %67 = vector.shape_cast %66 : vector<8xf32> to vector<8x1xf32>
    %68 = vector.broadcast %67 : vector<8x1xf32> to vector<8x8xf32>
    %69 = arith.divf %65, %68 : vector<8x8xf32>
    %cst_24 = arith.constant dense<0.000000e+00> : vector<8x16xf32>
    %70 = tpu.matmul %69, %59, %cst_24 {dimension_numbers = #tpu.dot_dimension_numbers<[1], [0], [0], [1], [0, 0, 1, 1], [], []>} : vector<8x8xf32>, vector<8x16xf32>, vector<8x16xf32> -> vector<8x16xf32>
    %71 = vector.extract_strided_slice %6 {offsets = [0, 192], sizes = [8, 16], strides = [1, 1]} : vector<8x384xf32> to vector<8x16xf32>
    %cst_25 = arith.constant 2.500000e-01 : f32
    %72 = vector.broadcast %cst_25 : f32 to vector<8x16xf32>
    %73 = arith.mulf %71, %72 : vector<8x16xf32>
    %74 = vector.extract_strided_slice %6 {offsets = [0, 256], sizes = [8, 16], strides = [1, 1]} : vector<8x384xf32> to vector<8x16xf32>
    %75 = vector.extract_strided_slice %6 {offsets = [0, 320], sizes = [8, 16], strides = [1, 1]} : vector<8x384xf32> to vector<8x16xf32>
    %cst_26 = arith.constant dense<0.000000e+00> : vector<8x8xf32>
    %76 = tpu.matmul %73, %74, %cst_26 {dimension_numbers = #tpu.dot_dimension_numbers<[1], [1], [0], [0], [0, 0, 1, 0], [], []>} : vector<8x16xf32>, vector<8x16xf32>, vector<8x8xf32> -> vector<8x8xf32>
    %cst_27 = arith.constant dense<0xFF800000> : vector<8xf32>
    %77 = vector.multi_reduction <maximumf>, %76, %cst_27 [1] : vector<8x8xf32> to vector<8xf32>
    %78 = vector.shape_cast %77 : vector<8xf32> to vector<8x1xf32>
    %79 = vector.broadcast %78 : vector<8x1xf32> to vector<8x8xf32>
    %80 = arith.subf %76, %79 : vector<8x8xf32>
    %81 = math.exp %80 : vector<8x8xf32>
    %cst_28 = arith.constant dense<0.000000e+00> : vector<8xf32>
    %82 = vector.multi_reduction <add>, %81, %cst_28 [1] : vector<8x8xf32> to vector<8xf32>
    %83 = vector.shape_cast %82 : vector<8xf32> to vector<8x1xf32>
    %84 = vector.broadcast %83 : vector<8x1xf32> to vector<8x8xf32>
    %85 = arith.divf %81, %84 : vector<8x8xf32>
    %cst_29 = arith.constant dense<0.000000e+00> : vector<8x16xf32>
    %86 = tpu.matmul %85, %75, %cst_29 {dimension_numbers = #tpu.dot_dimension_numbers<[1], [0], [0], [1], [0, 0, 1, 1], [], []>} : vector<8x8xf32>, vector<8x16xf32>, vector<8x16xf32> -> vector<8x16xf32>
    %87 = vector.extract_strided_slice %6 {offsets = [0, 208], sizes = [8, 16], strides = [1, 1]} : vector<8x384xf32> to vector<8x16xf32>
    %cst_30 = arith.constant 2.500000e-01 : f32
    %88 = vector.broadcast %cst_30 : f32 to vector<8x16xf32>
    %89 = arith.mulf %87, %88 : vector<8x16xf32>
    %90 = vector.extract_strided_slice %6 {offsets = [0, 272], sizes = [8, 16], strides = [1, 1]} : vector<8x384xf32> to vector<8x16xf32>
    %91 = vector.extract_strided_slice %6 {offsets = [0, 336], sizes = [8, 16], strides = [1, 1]} : vector<8x384xf32> to vector<8x16xf32>
    %cst_31 = arith.constant dense<0.000000e+00> : vector<8x8xf32>
    %92 = tpu.matmul %89, %90, %cst_31 {dimension_numbers = #tpu.dot_dimension_numbers<[1], [1], [0], [0], [0, 0, 1, 0], [], []>} : vector<8x16xf32>, vector<8x16xf32>, vector<8x8xf32> -> vector<8x8xf32>
    %cst_32 = arith.constant dense<0xFF800000> : vector<8xf32>
    %93 = vector.multi_reduction <maximumf>, %92, %cst_32 [1] : vector<8x8xf32> to vector<8xf32>
    %94 = vector.shape_cast %93 : vector<8xf32> to vector<8x1xf32>
    %95 = vector.broadcast %94 : vector<8x1xf32> to vector<8x8xf32>
    %96 = arith.subf %92, %95 : vector<8x8xf32>
    %97 = math.exp %96 : vector<8x8xf32>
    %cst_33 = arith.constant dense<0.000000e+00> : vector<8xf32>
    %98 = vector.multi_reduction <add>, %97, %cst_33 [1] : vector<8x8xf32> to vector<8xf32>
    %99 = vector.shape_cast %98 : vector<8xf32> to vector<8x1xf32>
    %100 = vector.broadcast %99 : vector<8x1xf32> to vector<8x8xf32>
    %101 = arith.divf %97, %100 : vector<8x8xf32>
    %cst_34 = arith.constant dense<0.000000e+00> : vector<8x16xf32>
    %102 = tpu.matmul %101, %91, %cst_34 {dimension_numbers = #tpu.dot_dimension_numbers<[1], [0], [0], [1], [0, 0, 1, 1], [], []>} : vector<8x8xf32>, vector<8x16xf32>, vector<8x16xf32> -> vector<8x16xf32>
    %103 = vector.extract_strided_slice %6 {offsets = [0, 224], sizes = [8, 16], strides = [1, 1]} : vector<8x384xf32> to vector<8x16xf32>
    %cst_35 = arith.constant 2.500000e-01 : f32
    %104 = vector.broadcast %cst_35 : f32 to vector<8x16xf32>
    %105 = arith.mulf %103, %104 : vector<8x16xf32>
    %106 = vector.extract_strided_slice %6 {offsets = [0, 288], sizes = [8, 16], strides = [1, 1]} : vector<8x384xf32> to vector<8x16xf32>
    %107 = vector.extract_strided_slice %6 {offsets = [0, 352], sizes = [8, 16], strides = [1, 1]} : vector<8x384xf32> to vector<8x16xf32>
    %cst_36 = arith.constant dense<0.000000e+00> : vector<8x8xf32>
    %108 = tpu.matmul %105, %106, %cst_36 {dimension_numbers = #tpu.dot_dimension_numbers<[1], [1], [0], [0], [0, 0, 1, 0], [], []>} : vector<8x16xf32>, vector<8x16xf32>, vector<8x8xf32> -> vector<8x8xf32>
    %cst_37 = arith.constant dense<0xFF800000> : vector<8xf32>
    %109 = vector.multi_reduction <maximumf>, %108, %cst_37 [1] : vector<8x8xf32> to vector<8xf32>
    %110 = vector.shape_cast %109 : vector<8xf32> to vector<8x1xf32>
    %111 = vector.broadcast %110 : vector<8x1xf32> to vector<8x8xf32>
    %112 = arith.subf %108, %111 : vector<8x8xf32>
    %113 = math.exp %112 : vector<8x8xf32>
    %cst_38 = arith.constant dense<0.000000e+00> : vector<8xf32>
    %114 = vector.multi_reduction <add>, %113, %cst_38 [1] : vector<8x8xf32> to vector<8xf32>
    %115 = vector.shape_cast %114 : vector<8xf32> to vector<8x1xf32>
    %116 = vector.broadcast %115 : vector<8x1xf32> to vector<8x8xf32>
    %117 = arith.divf %113, %116 : vector<8x8xf32>
    %cst_39 = arith.constant dense<0.000000e+00> : vector<8x16xf32>
    %118 = tpu.matmul %117, %107, %cst_39 {dimension_numbers = #tpu.dot_dimension_numbers<[1], [0], [0], [1], [0, 0, 1, 1], [], []>} : vector<8x8xf32>, vector<8x16xf32>, vector<8x16xf32> -> vector<8x16xf32>
    %119 = vector.extract_strided_slice %6 {offsets = [0, 240], sizes = [8, 16], strides = [1, 1]} : vector<8x384xf32> to vector<8x16xf32>
    %cst_40 = arith.constant 2.500000e-01 : f32
    %120 = vector.broadcast %cst_40 : f32 to vector<8x16xf32>
    %121 = arith.mulf %119, %120 : vector<8x16xf32>
    %122 = vector.extract_strided_slice %6 {offsets = [0, 304], sizes = [8, 16], strides = [1, 1]} : vector<8x384xf32> to vector<8x16xf32>
    %123 = vector.extract_strided_slice %6 {offsets = [0, 368], sizes = [8, 16], strides = [1, 1]} : vector<8x384xf32> to vector<8x16xf32>
    %cst_41 = arith.constant dense<0.000000e+00> : vector<8x8xf32>
    %124 = tpu.matmul %121, %122, %cst_41 {dimension_numbers = #tpu.dot_dimension_numbers<[1], [1], [0], [0], [0, 0, 1, 0], [], []>} : vector<8x16xf32>, vector<8x16xf32>, vector<8x8xf32> -> vector<8x8xf32>
    %cst_42 = arith.constant dense<0xFF800000> : vector<8xf32>
    %125 = vector.multi_reduction <maximumf>, %124, %cst_42 [1] : vector<8x8xf32> to vector<8xf32>
    %126 = vector.shape_cast %125 : vector<8xf32> to vector<8x1xf32>
    %127 = vector.broadcast %126 : vector<8x1xf32> to vector<8x8xf32>
    %128 = arith.subf %124, %127 : vector<8x8xf32>
    %129 = math.exp %128 : vector<8x8xf32>
    %cst_43 = arith.constant dense<0.000000e+00> : vector<8xf32>
    %130 = vector.multi_reduction <add>, %129, %cst_43 [1] : vector<8x8xf32> to vector<8xf32>
    %131 = vector.shape_cast %130 : vector<8xf32> to vector<8x1xf32>
    %132 = vector.broadcast %131 : vector<8x1xf32> to vector<8x8xf32>
    %133 = arith.divf %129, %132 : vector<8x8xf32>
    %cst_44 = arith.constant dense<0.000000e+00> : vector<8x16xf32>
    %134 = tpu.matmul %133, %123, %cst_44 {dimension_numbers = #tpu.dot_dimension_numbers<[1], [0], [0], [1], [0, 0, 1, 1], [], []>} : vector<8x8xf32>, vector<8x16xf32>, vector<8x16xf32> -> vector<8x16xf32>
    %135 = tpu.concatenate %22, %38, %54, %70, %86, %102, %118, %134 in 1 : vector<8x16xf32>, vector<8x16xf32>, vector<8x16xf32>, vector<8x16xf32>, vector<8x16xf32>, vector<8x16xf32>, vector<8x16xf32>, vector<8x16xf32> -> vector<8x128xf32>
    %c0_45 = arith.constant 0 : index
    %c0_46 = arith.constant 0 : index
    %136 = vector.load %arg5[%c0_45, %c0_46] : memref<3x128xf32, #tpu.memory_space<vmem>>, vector<3x128xf32>
    %c0_47 = arith.constant 0 : index
    %c0_48 = arith.constant 0 : index
    %137 = vector.load %arg4[%c0_47, %c0_48] : memref<128x128xbf16, #tpu.memory_space<vmem>>, vector<128x128xbf16>
    %138 = arith.extf %137 : vector<128x128xbf16> to vector<128x128xf32>
    %cst_49 = arith.constant dense<0.000000e+00> : vector<8x128xf32>
    %139 = tpu.matmul %135, %138, %cst_49 {dimension_numbers = #tpu.dot_dimension_numbers<[1], [0], [0], [1], [0, 0, 1, 1], [], []>} : vector<8x128xf32>, vector<128x128xf32>, vector<8x128xf32> -> vector<8x128xf32>
    %140 = vector.extract_strided_slice %136 {offsets = [0, 0], sizes = [1, 128], strides = [1, 1]} : vector<3x128xf32> to vector<1x128xf32>
    %141 = vector.broadcast %140 : vector<1x128xf32> to vector<8x128xf32>
    %142 = arith.addf %139, %141 : vector<8x128xf32>
    %143 = arith.addf %142, %0 : vector<8x128xf32>
    %c0_50 = arith.constant 0 : index
    %c0_51 = arith.constant 0 : index
    %144 = vector.load %arg6[%c0_50, %c0_51] : memref<128x128xbf16, #tpu.memory_space<vmem>>, vector<128x128xbf16>
    %145 = arith.extf %144 : vector<128x128xbf16> to vector<128x128xf32>
    %146 = arith.mulf %143, %143 : vector<8x128xf32>
    %147 = tpu.concatenate %143, %146 in 0 : vector<8x128xf32>, vector<8x128xf32> -> vector<16x128xf32>
    %cst_52 = arith.constant dense<0.000000e+00> : vector<16x128xf32>
    %148 = tpu.matmul %147, %145, %cst_52 {dimension_numbers = #tpu.dot_dimension_numbers<[1], [0], [0], [1], [0, 0, 1, 1], [], []>} : vector<16x128xf32>, vector<128x128xf32>, vector<16x128xf32> -> vector<16x128xf32>
    %149 = vector.extract_strided_slice %148 {offsets = [0, 0], sizes = [8, 128], strides = [1, 1]} : vector<16x128xf32> to vector<8x128xf32>
    %150 = vector.extract_strided_slice %148 {offsets = [8, 0], sizes = [8, 128], strides = [1, 1]} : vector<16x128xf32> to vector<8x128xf32>
    %151 = arith.mulf %149, %149 : vector<8x128xf32>
    %152 = arith.subf %150, %151 : vector<8x128xf32>
    %153 = arith.subf %143, %149 : vector<8x128xf32>
    %cst_53 = arith.constant 9.99999974E-6 : f32
    %154 = vector.broadcast %cst_53 : f32 to vector<8x128xf32>
    %155 = arith.addf %152, %154 : vector<8x128xf32>
    %156 = math.rsqrt %155 : vector<8x128xf32>
    %157 = arith.mulf %153, %156 : vector<8x128xf32>
    %158 = vector.extract_strided_slice %136 {offsets = [1, 0], sizes = [1, 128], strides = [1, 1]} : vector<3x128xf32> to vector<1x128xf32>
    %159 = vector.broadcast %158 : vector<1x128xf32> to vector<8x128xf32>
    %160 = arith.mulf %157, %159 : vector<8x128xf32>
    %161 = vector.extract_strided_slice %136 {offsets = [2, 0], sizes = [1, 128], strides = [1, 1]} : vector<3x128xf32> to vector<1x128xf32>
    %162 = vector.broadcast %161 : vector<1x128xf32> to vector<8x128xf32>
    %163 = arith.addf %160, %162 : vector<8x128xf32>
    %c0_54 = arith.constant 0 : index
    %c0_55 = arith.constant 0 : index
    %164 = vector.load %arg7[%c0_54, %c0_55] : memref<8x128xf32, #tpu.memory_space<vmem>>, vector<8x128xf32>
    tpu.vector_store %arg7[%c0_54, %c0_55], %163 {strides = array<i32>} : memref<8x128xf32, #tpu.memory_space<vmem>>, vector<8x128xf32>,
    return
  }
  func.func @transform_0(%arg0: i32) -> (i32, i32) {
    %c0_i32 = arith.constant 0 : i32
    %c0_i32_0 = arith.constant 0 : i32
    %c0_i32_1 = arith.constant 0 : i32
    return %c0_i32, %c0_i32_0 : i32, i32
  }
  func.func @transform_1(%arg0: i32) -> (i32, i32) {
    %c0_i32 = arith.constant 0 : i32
    %c0_i32_0 = arith.constant 0 : i32
    %c0_i32_1 = arith.constant 0 : i32
    return %c0_i32, %c0_i32_0 : i32, i32
  }
  func.func @transform_2(%arg0: i32) -> (i32, i32) {
    %c0_i32 = arith.constant 0 : i32
    %c0_i32_0 = arith.constant 0 : i32
    %c0_i32_1 = arith.constant 0 : i32
    return %c0_i32, %c0_i32_0 : i32, i32
  }
  func.func @transform_3(%arg0: i32) -> (i32, i32) {
    %c0_i32 = arith.constant 0 : i32
    %c0_i32_0 = arith.constant 0 : i32
    %c0_i32_1 = arith.constant 0 : i32
    return %c0_i32, %c0_i32_0 : i32, i32
  }
  func.func @transform_4(%arg0: i32) -> (i32, i32) {
    %c0_i32 = arith.constant 0 : i32
    %c0_i32_0 = arith.constant 0 : i32
    %c0_i32_1 = arith.constant 0 : i32
    return %c0_i32, %c0_i32_0 : i32, i32
  }
  func.func @transform_5(%arg0: i32) -> (i32, i32) {
    %c0_i32 = arith.constant 0 : i32
    %c0_i32_0 = arith.constant 0 : i32
    %c0_i32_1 = arith.constant 0 : i32
    return %c0_i32, %c0_i32_0 : i32, i32
  }
  func.func @transform_6(%arg0: i32) -> (i32, i32) {
    %c0_i32 = arith.constant 0 : i32
    %c0_i32_0 = arith.constant 0 : i32
    %c0_i32_1 = arith.constant 0 : i32
    return %c0_i32, %c0_i32_0 : i32, i32
  }
}

</mosaic_0001>

<bundles_post_ra>
// kernel: self_attention_block_pallas.1
= control target key start
LH: loop header
LB: loop body
LE: loop exit
PB: predicated region body
PF: predicated region fallthrough
CT: control target
= control target key end

     0   :  { %11 = vsyncpa [#allocation3], 0  ;;  %s2864_s0 = inlined_call_operand.vmem [shape: f32[8,128], index: 0, kind: input, shape index: {}]   ;;  %s2865_s1 = inlined_call_operand.hbm [shape: bf16[128,384], index: 1, kind: input, shape index: {}]   ;;  %s2866_s2 = inlined_call_operand.vmem [shape: f32[1,384], index: 2, kind: input, shape index: {}]   ;;  %s2867_s3 = inlined_call_operand.hbm [shape: bf16[128,128], index: 3, kind: input, shape index: {}]   ;;  %s2868_s4 = inlined_call_operand.vmem [shape: f32[3,128], index: 4, kind: input, shape index: {}]   ;;  %s2869_s5 = inlined_call_operand.hbm [shape: bf16[128,128], index: 5, kind: input, shape index: {}]   ;;  %s2870_s6 = inlined_call_operand.vmem [shape: f32[8,128], index: 6, kind: output, shape index: {}]  }
   0x1   :  { %12 = vsyncpa [#allocation5], 0  ;;  %s2564_s21 = smov [#allocation4]   ;;  %s2494_s25 = scalar_lea.hbm %s2867_s3, 1024 }
   0x2   :  { %s34_s22 = sshll.u32 %s2564_s21, 4  ;;  %p2495_p0 = scmp.ne.s32.totalorder %s2867_s3, %s2494_s25  ;;  %s35_s22 = int_to_ptr.vmem [resolvable:$true] %s34_s22 }
   0x3   :  { %p2498_p1 = scmp.lt.u32.totalorder %s2494_s25, %s2867_s3 }
   0x5   :  { %p2500_p2 = pnand %p2498_p1, %p2495_p0 }
   0x7   :  { %2503 = shalt.err (!%p2500_p2)
}
   0x8   :  { %s2504_s30 = scalar_lea.vmem %s35_s22, 1024  ;;  %p2509_p4 = scmp.lt.s32.totalorder %s35_s22, %s35_s22 }
   0x9   :  { %p2505_p3 = scmp.ne.s32.totalorder %s35_s22, %s2504_s30  ;;  %p2510_p5 = scmp.lt.s32.totalorder %s2504_s30, %s2504_s30 }
   0xb   :  { %p2511_p6 = por %p2510_p5, %p2509_p4 }
   0xd   :  { %p2512_p7 = pnand %p2511_p6, %p2505_p3 }
   0xf   :  { %2515 = shalt.err (!%p2512_p7)
}
  0x10   :  { %s2565_s7 = smov 64   ;;  %s2566_s8 = smov 4  }
  0x11   :  { %40 = dma.hbm_to_vmem [thread:$0]  %s2867_s3, 1024, %s35_s22, [#allocation5], %s2565_s7, %s2565_s7, %s2566_s8  }
  0x12   :  { %s2567_s11 = smov [#allocation2]   ;;  %s2516_s15 = scalar_lea.hbm %s2865_s1, 3072 }
  0x13   :  { %s20_s12 = sshll.u32 %s2567_s11, 4  ;;  %p2517_p8 = scmp.ne.s32.totalorder %s2865_s1, %s2516_s15  ;;  %s21_s12 = int_to_ptr.vmem [resolvable:$true] %s20_s12 }
  0x14   :  { %p2520_p9 = scmp.lt.u32.totalorder %s2516_s15, %s2865_s1 }
  0x16   :  { %p2522_p10 = pnand %p2520_p9, %p2517_p8 }
  0x18   :  { %2525 = shalt.err (!%p2522_p10)
}
  0x19   :  { %s2526_s20 = scalar_lea.vmem %s21_s12, 3072  ;;  %p2531_p12 = scmp.lt.s32.totalorder %s21_s12, %s21_s12 }
  0x1a   :  { %p2527_p11 = scmp.ne.s32.totalorder %s21_s12, %s2526_s20  ;;  %p2532_p13 = scmp.lt.s32.totalorder %s2526_s20, %s2526_s20 }
  0x1c   :  { %p2533_p0 = por %p2532_p13, %p2531_p12 }
  0x1e   :  { %p2534_p1 = pnand %p2533_p0, %p2527_p11 }
  0x20   :  { %2537 = shalt.err (!%p2534_p1)
}
  0x21   :  { %s2568_s3 = smov 192   ;;  %s2569_s21 = smov 12  }
  0x22   :  { %26 = dma.hbm_to_vmem [thread:$0]  %s2865_s1, 3072, %s21_s12, [#allocation3], %s2568_s3, %s2568_s3, %s2569_s21  }
  0x23   :  { %s2570_s24 = smov [#allocation6]   ;;  %s2538_s28 = scalar_lea.hbm %s2869_s5, 1024 }
  0x24   :  { %s48_s25 = sshll.u32 %s2570_s24, 4  ;;  %p2539_p2 = scmp.ne.s32.totalorder %s2869_s5, %s2538_s28  ;;  %s49_s25 = int_to_ptr.vmem [resolvable:$true] %s48_s25 }
  0x25   :  { %p2542_p3 = scmp.lt.u32.totalorder %s2538_s28, %s2869_s5 }
  0x27   :  { %p2544_p4 = pnand %p2542_p3, %p2539_p2 }
  0x29   :  { %2547 = shalt.err (!%p2544_p4)
}
  0x2a   :  { %s2548_s11 = scalar_lea.vmem %s49_s25, 1024  ;;  %p2553_p6 = scmp.lt.s32.totalorder %s49_s25, %s49_s25 }
  0x2b   :  { %p2549_p5 = scmp.ne.s32.totalorder %s49_s25, %s2548_s11  ;;  %p2554_p7 = scmp.lt.s32.totalorder %s2548_s11, %s2548_s11 }
  0x2d   :  { %p2555_p8 = por %p2554_p7, %p2553_p6 }
  0x2f   :  { %p2556_p9 = pnand %p2555_p8, %p2549_p5 }
  0x31   :  { %2559 = shalt.err (!%p2556_p9)
}
  0x32   :  { %54 = dma.hbm_to_vmem [thread:$0]  %s2869_s5, 1024, %s49_s25, [#allocation5], %s2565_s7, %s2565_s7, %s2566_s8  }
  0x33   :  { %2560 = dma.done.wait [#allocation3], 3072  }
  0x34   :  { %2561 = vsyncadd [#allocation3], 4294964224 }
  0x35   :  { %2562 = dma.done.wait [#allocation5], 2048  }
  0x36   :  { %2563 = vsyncadd [#allocation5], 4294965248  ;;  %v2571_v0 = vmov 0.0|0.0   ;;  %v2572_v1 = vmov 0.0   ;;  %vm2573_vm0 = vmmov 0   ;;  %v2669_v25 = vld [vmem:[%s2864_s0] sm:$0xff]  ;;  %v147_v27 = vlaneseq }
  0x37   :  { %2308 = vmatprep.subr.bf16.mxu1 %v2571_v0  ;;  %226 = vmatprep.mubr.f32.mxu0 %v2572_v1  ;;  %v2428_v2 = vld [vmem:[#allocation2 + $0x4] ss:$12 sps:$4 sm:$0xff]   ;;  %v2430_v3 = vld [vmem:[#allocation2] ss:$12 sps:$4 sm:$0xff]   ;;  %v2431_v4 = vld [vmem:[#allocation2 + $0x1c] ss:$12 sps:$4 sm:$0xff]  }
  0x38   :  { %2123 = vmatprep.mubr.msk.f32.mxu1 %vm2573_vm0, %v2572_v1  ;;  %2277 = vmatprep.subr.bf16.mxu0 %v2428_v2  ;;  %v2433_v5 = vld [vmem:[#allocation2 + $0x18] ss:$12 sps:$4 sm:$0xff]   ;;  %v2434_v6 = vld [vmem:[#allocation2 + $0x34] ss:$12 sps:$4 sm:$0xff]   ;;  %v2436_v7 = vld [vmem:[#allocation2 + $0x30] ss:$12 sps:$4 sm:$0xff]  }
  0x39   :  { %2279 = vmatpush1.bf16.msra.mxu0 %v2430_v3  ;;  %v2437_v8 = vld [vmem:[#allocation2 + $0x4c] ss:$12 sps:$4 sm:$0xff]   ;;  %v2446_v9 = vld [vmem:[#allocation2 + $0x8] ss:$12 sps:$4 sm:$0xff]   ;;  %v2440_v12 = vld [vmem:[#allocation2 + $0x64] ss:$12 sps:$4 sm:$0xff]  }
  0x3a   :  { %2281 = vmatprep.subr.bf16.mxu0 %v2431_v4  ;;  %v2439_v10 = vld [vmem:[#allocation2 + $0x48] ss:$12 sps:$4 sm:$0xff]   ;;  %2310 = vmatpush3.bf16.msra.mxu1 %v2446_v9  ;;  %v2450_v11 = vld [vmem:[#allocation2 + $0x20] ss:$12 sps:$4 sm:$0xff]   ;;  %v2454_v13 = vld [vmem:[#allocation2 + $0x38] ss:$12 sps:$4 sm:$0xff]  }
  0x3b   :  { %2311 = vmatprep.subr.bf16.mxu1 %v2571_v0  ;;  %v2442_v14 = vld [vmem:[#allocation2 + $0x60] ss:$12 sps:$4 sm:$0xff]   ;;  %v2443_v15 = vld [vmem:[#allocation2 + $0x7c] ss:$12 sps:$4 sm:$0xff]   ;;  %v2445_v17 = vld [vmem:[#allocation2 + $0x78] ss:$12 sps:$4 sm:$0xff]  }
  0x3c   :  { %v2455_v16 = vld [vmem:[#allocation2 + $0x50] ss:$12 sps:$4 sm:$0xff]   ;;  %v2447_v18 = vld [vmem:[#allocation2 + $0x94] ss:$12 sps:$4 sm:$0xff]   ;;  %v2451_v21 = vld [vmem:[#allocation2 + $0xac] ss:$12 sps:$4 sm:$0xff]  }
  0x3d   :  { %2283 = vmatpush1.bf16.msra.mxu0 %v2433_v5  ;;  %v2456_v19 = vld [vmem:[#allocation2 + $0x68] ss:$12 sps:$4 sm:$0xff]   ;;  %v2449_v20 = vld [vmem:[#allocation2 + $0x90] ss:$12 sps:$4 sm:$0xff]   ;;  %v2457_v22 = vld [vmem:[#allocation2 + $0x80] ss:$12 sps:$4 sm:$0xff]  }
  0x3e   :  { %2285 = vmatprep.subr.bf16.mxu0 %v2434_v6  ;;  %2313 = vmatpush3.bf16.msra.mxu1 %v2450_v11  ;;  %v2453_v23 = vld [vmem:[#allocation2 + $0xa8] ss:$12 sps:$4 sm:$0xff]   ;;  %v2458_v24 = vld [vmem:[#allocation2 + $0x98] ss:$12 sps:$4 sm:$0xff]   ;;  %v2459_v26 = vld [vmem:[#allocation2 + $0xb0] ss:$12 sps:$4 sm:$0xff]  }
  0x3f   :  { %2314 = vmatprep.subr.bf16.mxu1 %v2571_v0  ;;  %v2681_v28 = vshrl.u32 %v147_v27, 7  ;;  %v145_v30 = vld [vmem:[%s2866_s2] sm:$0x7]  ;;  %s2574_s14 = smov 112   ;;  %s2575_s2 = smov 48   ;;  %vm307_vm1 = vcmask 130048  }
  0x40   :  { %s2576_s15 = smov 32   ;;  %s2577_s16 = smov 96   ;;  %vm383_vm2 = vcmask 64512   ;;  %vm1654_vm3 = vcmask 261120   ;;  %vm1656_vm4 = vcmask 392192   ;;  %vm1658_vm5 = vcmask 523264  }
  0x41   :  { %2287 = vmatpush1.bf16.msra.mxu0 %v2436_v7  ;;  %v149_v29 = vsub.s32 0, %v2681_v28  ;;  %v153_v31 = vsub.s32 1, %v2681_v28  ;;  %v157_v39 = vsub.s32 2, %v2681_v28  ;;  %s2578_s17 = smov 16   ;;  %s2579_s18 = smov 80   ;;  %vm1660_vm6 = vcmask 654336  }
  0x42   :  { %2289 = vmatprep.subr.bf16.mxu0 %v2437_v8  ;;  %2316 = vmatpush3.bf16.msra.mxu1 %v2454_v13  ;;  %vm1662_vm7 = vcmask 785408   ;;  %vm1664_vm8 = vcmask 916480  }
  0x43   :  { %2317 = vmatprep.subr.bf16.mxu1 %v2571_v0  ;;  %v150_v32 = vrot.slane %v145_v30, %v149_v29  ;;  %v154_v33 = vrot.slane %v145_v30, %v153_v31  ;;  %v158_v42 = vrot.slane %v145_v30, %v157_v39 }
  0x45   :  { %2291 = vmatpush1.bf16.msra.mxu0 %v2439_v10 }
  0x46   :  { %2293 = vmatprep.subr.bf16.mxu0 %v2440_v12  ;;  %2319 = vmatpush3.bf16.msra.mxu1 %v2455_v16 }
  0x47   :  { %2320 = vmatprep.subr.bf16.mxu1 %v2571_v0 }
  0x49   :  { %2295 = vmatpush1.bf16.msra.mxu0 %v2442_v14 }
  0x4a   :  { %2297 = vmatprep.subr.bf16.mxu0 %v2443_v15  ;;  %2322 = vmatpush3.bf16.msra.mxu1 %v2456_v19 }
  0x4b   :  { %2323 = vmatprep.subr.bf16.mxu1 %v2571_v0 }
  0x4d   :  { %2299 = vmatpush1.bf16.msra.mxu0 %v2445_v17 }
  0x4e   :  { %2301 = vmatprep.subr.bf16.mxu0 %v2447_v18  ;;  %2325 = vmatpush3.bf16.msra.mxu1 %v2457_v22 }
  0x4f   :  { %2326 = vmatprep.subr.bf16.mxu1 %v2571_v0 }
  0x51   :  { %2303 = vmatpush1.bf16.msra.mxu0 %v2449_v20 }
  0x52   :  { %2305 = vmatprep.subr.bf16.mxu0 %v2451_v21  ;;  %2328 = vmatpush3.bf16.msra.mxu1 %v2458_v24 }
  0x53   :  { %2329 = vmatprep.subr.bf16.mxu1 %v2571_v0 }
  0x55   :  { %2307 = vmatpush1.bf16.msra.mxu0 %v2453_v23 }
  0x56   :  { %2126 = vmatprep.subr.mxu0 %v2572_v1  ;;  %2331 = vmatpush3.bf16.msra.mxu1 %v2459_v26 }
  0x57   :  { %2131 = vmatprep.subr.mxu1 %v2572_v1 }
  0x58   :  { %227 = vmatmul.mubr.f32.vlgmr.msra.gmra.mrb[0].mxu0 %v2669_v25 }
  0x59   :  { %2128 = vmatprep.mubr.msk.f32.mxu0 %vm2573_vm0, %v2572_v1  ;;  %2124 = vmatmul.mubr.f32.vlgmr.msra.gmra.mrb[0].mxu1 %v2669_v25 }
  0x5a   :  { %2133 = vmatprep.mubr.msk.f32.mxu1 %vm2573_vm0, %v2572_v1 }
 0x12b   :  { %v228_v34 = vpop.f32.mrb[0].mxu0 }
 0x12c   :  { %v229_v35 = vadd.f32 %v228_v34, %v150_v32  ;;  %v230_v36 = vpop.f32.mrb[1].mxu0  ;;  %v299_v40 = vpop.f32.mrb[0].mxu1 }
 0x12d   :  { %v2692_v37 = vadd.f32 %v230_v36, %v154_v33  ;;  %v2125_v41 = vpop.f32.mrb[1].mxu1  ;;  %v2707_v44 = vadd.f32 %v299_v40, %v158_v42 }
 0x12e   :  { %305 = vrot.lane.b32.xlu0 %v229_v35, %s2565_s7  ;;  %v303_v38 = vmul.f32 0.25, %v229_v35 }
 0x12f   :  { %2132 = vmatpush3.msra.mxu1 %v2692_v37  ;;  %v964_v43 = vmul.f32 0.25, %v2692_v37 }
 0x130   :  { %468 = vrot.lane.b32.xlu1 %v303_v38, %s2574_s14  ;;  %2141 = vmatprep.subr.mxu1 %v2572_v1 }
 0x132   :  { %470 = vrot.lane.b32.xlu0 %v229_v35, %s2575_s2 }
 0x134   :  { %636 = vrot.lane.b32.xlu1 %v229_v35, %s2576_s15 }
 0x136   :  { %634 = vrot.lane.b32.xlu0 %v303_v38, %s2577_s16 }
 0x138   :  { %801 = vrot.lane.b32.xlu1 %v229_v35, %s2578_s17 }
 0x13a   :  { %799 = vrot.lane.b32.xlu0 %v303_v38, %s2579_s18 }
 0x13c   :  { %966 = vrot.lane.b32.xlu1 %v964_v43, %s2565_s7 }
 0x13e   :  { %1132 = vrot.lane.b32.xlu0 %v2707_v44, %s2574_s14 }
 0x140   :  { %1130 = vrot.lane.b32.xlu1 %v964_v43, %s2575_s2 }
 0x142   :  { %1297 = vrot.lane.b32.xlu0 %v2707_v44, %s2577_s16 }
 0x144   :  { %1295 = vrot.lane.b32.xlu1 %v964_v43, %s2576_s15 }
 0x146   :  { %1462 = vrot.lane.b32.xlu0 %v2707_v44, %s2579_s18 }
 0x148   :  { %1460 = vrot.lane.b32.xlu1 %v964_v43, %s2578_s17 }
 0x14c   :  { %558 = vrot.lane.b32.xlu1 %v2692_v37, %s2574_s14 }
 0x1a0   :  { %v306_v45 = vpop.permute.xlu0 %305 }
 0x1a1   :  { %2127 = vmatpush3.xpose.msk.msra.mxu0 %vm307_vm1, %v306_v45 }
 0x1a2   :  { %v469_v46 = vpop.permute.xlu1 %468  ;;  %2136 = vmatprep.subr.mxu0 %v2572_v1 }
 0x1a4   :  { %v471_v47 = vpop.permute.xlu0 %470  ;;  %2129 = vmatmul.mubr.msk.f32.vlgmr.msra.gmra.mrb[2].mxu0 %vm307_vm1, %v303_v38 }
 0x1a5   :  { %2137 = vmatpush3.xpose.msk.msra.mxu0 %vm307_vm1, %v471_v47  ;;  %2138 = vmatprep.mubr.msk.f32.mxu0 %vm2573_vm0, %v2572_v1 }
 0x1a6   :  { %v637_v48 = vpop.permute.xlu1 %636  ;;  %2146 = vmatprep.subr.mxu0 %v2572_v1 }
 0x1a8   :  { %v635_v49 = vpop.permute.xlu0 %634  ;;  %2139 = vmatmul.mubr.msk.f32.vlgmr.msra.gmra.mrb[4].mxu0 %vm307_vm1, %v469_v46 }
 0x1a9   :  { %2147 = vmatpush3.xpose.msk.msra.mxu0 %vm307_vm1, %v637_v48  ;;  %2148 = vmatprep.mubr.msk.f32.mxu0 %vm2573_vm0, %v2572_v1 }
 0x1aa   :  { %v802_v50 = vpop.permute.xlu1 %801  ;;  %2156 = vmatprep.subr.mxu0 %v2572_v1 }
 0x1ac   :  { %v800_v51 = vpop.permute.xlu0 %799  ;;  %2149 = vmatmul.mubr.msk.f32.vlgmr.msra.gmra.mrb[6].mxu0 %vm307_vm1, %v635_v49 }
 0x1ad   :  { %2157 = vmatpush3.xpose.msk.msra.mxu0 %vm307_vm1, %v802_v50  ;;  %2158 = vmatprep.mubr.msk.f32.mxu0 %vm2573_vm0, %v2572_v1 }
 0x1ae   :  { %v967_v52 = vpop.permute.xlu1 %966  ;;  %2166 = vmatprep.subr.mxu0 %v2572_v1 }
 0x1b0   :  { %2159 = vmatmul.mubr.msk.f32.vlgmr.msra.gmra.mrb[8].mxu0 %vm307_vm1, %v800_v51  ;;  %v1133_v53 = vpop.permute.xlu0 %1132 }
 0x1b1   :  { %2167 = vmatpush3.xpose.msk.msra.mxu0 %vm307_vm1, %v2707_v44  ;;  %2168 = vmatprep.mubr.msk.f32.mxu0 %vm2573_vm0, %v2572_v1 }
 0x1b2   :  { %2176 = vmatprep.subr.mxu0 %v2572_v1  ;;  %v1131_v54 = vpop.permute.xlu1 %1130 }
 0x1b4   :  { %2169 = vmatmul.mubr.msk.f32.vlgmr.msra.gmra.mrb[10].mxu0 %vm307_vm1, %v967_v52  ;;  %v1298_v55 = vpop.permute.xlu0 %1297 }
 0x1b5   :  { %2177 = vmatpush3.xpose.msk.msra.mxu0 %vm307_vm1, %v1133_v53  ;;  %2178 = vmatprep.mubr.msk.f32.mxu0 %vm2573_vm0, %v2572_v1 }
 0x1b6   :  { %2186 = vmatprep.subr.mxu0 %v2572_v1  ;;  %v1296_v56 = vpop.permute.xlu1 %1295 }
 0x1b8   :  { %2179 = vmatmul.mubr.msk.f32.vlgmr.msra.gmra.mrb[12].mxu0 %vm307_vm1, %v1131_v54  ;;  %v1463_v57 = vpop.permute.xlu0 %1462 }
 0x1b9   :  { %2187 = vmatpush3.xpose.msk.msra.mxu0 %vm307_vm1, %v1298_v55  ;;  %2188 = vmatprep.mubr.msk.f32.mxu0 %vm2573_vm0, %v2572_v1 }
 0x1ba   :  { %2196 = vmatprep.subr.mxu0 %v2572_v1  ;;  %v1461_v58 = vpop.permute.xlu1 %1460 }
 0x1bc   :  { %2189 = vmatmul.mubr.msk.f32.vlgmr.msra.gmra.mrb[14].mxu0 %vm307_vm1, %v1296_v56 }
 0x1bd   :  { %2197 = vmatpush3.xpose.msk.msra.mxu0 %vm307_vm1, %v1463_v57  ;;  %2198 = vmatprep.mubr.msk.f32.mxu0 %vm2573_vm0, %v2572_v1 }
 0x1be   :  { %2332 = vmatprep.subr.bf16.mxu0 %v2571_v0  ;;  %v2774_v21 = vpop.permute.xlu1 %558 }
 0x1c0   :  { %2199 = vmatmul.mubr.msk.f32.vlgmr.msra.gmra.mrb[16].mxu0 %vm307_vm1, %v1461_v58 }
 0x1c1   :  { %2238 = vmatprep.mubr.msk.f32.mxu0 %vm2573_vm0, %v2572_v1 }
 0x277   :  { %v379_v59 = vpop.f32.mrb[2].mxu0 }
 0x278   :  { %v2130_v60 = vpop.f32.mrb[3].mxu0  ;;  %v384_v61 = vsel %vm383_vm2, %v379_v59, -inf }
 0x279   :  { %385 = vmax.xlane.f32.xlu0 %v384_v61 }
 0x27b   :  { %v542_v62 = vpop.f32.mrb[4].mxu0 }
 0x27c   :  { %v2140_v63 = vpop.f32.mrb[5].mxu0  ;;  %v546_v2 = vsel %vm383_vm2, %v542_v62, -inf }
 0x27d   :  { %547 = vmax.xlane.f32.xlu1 %v546_v2 }
 0x27f   :  { %v708_v3 = vpop.f32.mrb[6].mxu0 }
 0x280   :  { %v2150_v4 = vpop.f32.mrb[7].mxu0  ;;  %v712_v5 = vsel %vm383_vm2, %v708_v3, -inf }
 0x281   :  { %713 = vmax.xlane.f32.xlu0 %v712_v5 }
 0x283   :  { %v873_v6 = vpop.f32.mrb[8].mxu0 }
 0x284   :  { %v2160_v7 = vpop.f32.mrb[9].mxu0  ;;  %v877_v8 = vsel %vm383_vm2, %v873_v6, -inf }
 0x285   :  { %878 = vmax.xlane.f32.xlu0 %v877_v8 }
 0x287   :  { %v1039_v9 = vpop.f32.mrb[10].mxu0 }
 0x288   :  { %v2170_v10 = vpop.f32.mrb[11].mxu0  ;;  %v1043_v11 = vsel %vm383_vm2, %v1039_v9, -inf }
 0x289   :  { %1044 = vmax.xlane.f32.xlu1 %v1043_v11 }
 0x28b   :  { %v1204_v12 = vpop.f32.mrb[12].mxu0 }
 0x28c   :  { %v2180_v13 = vpop.f32.mrb[13].mxu0  ;;  %v1208_v14 = vsel %vm383_vm2, %v1204_v12, -inf }
 0x28d   :  { %1209 = vmax.xlane.f32.xlu0 %v1208_v14 }
 0x28f   :  { %v1369_v15 = vpop.f32.mrb[14].mxu0 }
 0x290   :  { %v2190_v16 = vpop.f32.mrb[15].mxu0  ;;  %v1373_v17 = vsel %vm383_vm2, %v1369_v15, -inf }
 0x291   :  { %1374 = vmax.xlane.f32.xlu1 %v1373_v17 }
 0x293   :  { %v1534_v18 = vpop.f32.mrb[16].mxu0 }
 0x294   :  { %v2200_v19 = vpop.f32.mrb[17].mxu0  ;;  %v1538_v20 = vsel %vm383_vm2, %v1534_v18, -inf }
 0x295   :  { %1539 = vmax.xlane.f32.xlu0 %v1538_v20 }
 0x2a2   :  { %888 = vrot.lane.b32.xlu1 %v2692_v37, %s2579_s18 }
 0x2ab   :  { %723 = vrot.lane.b32.xlu0 %v2692_v37, %s2577_s16 }
 0x306   :  { %v386_v22 = vpop.xlane.xlu0 %385 }
 0x307   :  { %v387_v23 = vsub.f32 %v379_v59, %v386_v22 }
 0x309   :  { %v388_v24 = vmul.f32 1.442695, %v387_v23 }
 0x30a   :  { %v548_v26 = vpop.xlane.xlu1 %547 }
 0x30b   :  { %2460 = vpow2.f32 %v388_v24  ;;  %v549_v27 = vsub.f32 %v542_v62, %v548_v26 }
 0x30d   :  { %v550_v30 = vmul.f32 1.442695, %v549_v27 }
 0x30e   :  { %v714_v32 = vpop.xlane.xlu0 %713 }
 0x30f   :  { %2462 = vpow2.f32 %v550_v30  ;;  %v715_v43 = vsub.f32 %v708_v3, %v714_v32 }
 0x311   :  { %v716_v46 = vmul.f32 1.442695, %v715_v43 }
 0x312   :  { %v879_v33 = vpop.xlane.xlu0 %878 }
 0x313   :  { %v880_v34 = vsub.f32 %v873_v6, %v879_v33 }
 0x315   :  { %v2461_v35 = vpop.eup %2460  ;;  %v881_v36 = vmul.f32 1.442695, %v880_v34 }
 0x316   :  { %v390_v38 = vsel %vm383_vm2, %v2461_v35, 0.0  ;;  %v1045_v45 = vpop.xlane.xlu1 %1044 }
 0x317   :  { %2464 = vpow2.f32 %v881_v36  ;;  %391 = vadd.xlane.f32.xlu1 %v390_v38  ;;  %v1046_v47 = vsub.f32 %v1039_v9, %v1045_v45 }
 0x318   :  { %2466 = vpow2.f32 %v716_v46 }
 0x319   :  { %v2463_v37 = vpop.eup %2462  ;;  %v1047_v49 = vmul.f32 1.442695, %v1046_v47  ;;  %v1995_v47 = vld [vmem:[#allocation4 + $0x18] sm:$0xff]  }
 0x31a   :  { %v552_v40 = vsel %vm383_vm2, %v2463_v37, 0.0  ;;  %v1210_v51 = vpop.xlane.xlu0 %1209 }
 0x31b   :  { %553 = vadd.xlane.f32.xlu0 %v552_v40  ;;  %2468 = vpow2.f32 %v1047_v49  ;;  %v1211_v52 = vsub.f32 %v1204_v12, %v1210_v51  ;;  %v1930_v40 = vld [vmem:[#allocation4] sm:$0xff]   ;;  %v1997_v49 = vld [vmem:[#allocation4 + $0x28] sm:$0xff]   ;;  %v1998_v51 = vld [vmem:[#allocation4 + $0x30] sm:$0xff]  }
 0x31c   :  { %2334 = vmatpush3.bf16.msra.mxu0 %v1930_v40 }
 0x31d   :  { %v1212_v55 = vmul.f32 1.442695, %v1211_v52  ;;  %2335 = vmatprep.subr.bf16.mxu0 %v2571_v0 }
 0x31e   :  { %v1375_v48 = vpop.xlane.xlu1 %1374 }
 0x31f   :  { %v1376_v50 = vsub.f32 %v1369_v15, %v1375_v48  ;;  %v1996_v48 = vld [vmem:[#allocation4 + $0x20] sm:$0xff]  }
 0x321   :  { %v2778_v41 = vpop.eup %2464  ;;  %v1377_v53 = vmul.f32 1.442695, %v1376_v50 }
 0x322   :  { %v883_v42 = vsel %vm383_vm2, %v2778_v41, 0.0  ;;  %v1540_v54 = vpop.xlane.xlu0 %1539  ;;  %v2467_v57 = vpop.eup %2466 }
 0x323   :  { %884 = vadd.xlane.f32.xlu0 %v883_v42  ;;  %2470 = vpow2.f32 %v1377_v53  ;;  %v1541_v56 = vsub.f32 %v1534_v18, %v1540_v54  ;;  %v718_v59 = vsel %vm383_vm2, %v2467_v57, 0.0  ;;  %v889_v6 = vpop.permute.xlu1 %888  ;;  %v1994_v42 = vld [vmem:[#allocation4 + $0x10] sm:$0xff]   ;;  %v1999_v54 = vld [vmem:[#allocation4 + $0x38] sm:$0xff]  }
 0x324   :  { %2472 = vpow2.f32 %v1212_v55 }
 0x325   :  { %v1542_v58 = vmul.f32 1.442695, %v1541_v56  ;;  %v2469_v60 = vpop.eup %2468 }
 0x326   :  { %v1049_v61 = vsel %vm383_vm2, %v2469_v60, 0.0  ;;  %v724_v7 = vpop.permute.xlu0 %723 }
 0x327   :  { %2474 = vpow2.f32 %v1542_v58  ;;  %v1962_v58 = vld [vmem:[#allocation6] sm:$0xff]  }
 0x328   :  { %1054 = vrot.lane.b32.xlu1 %v2707_v44, %s2565_s7 }
 0x32d   :  { %v2788_v62 = vpop.eup %2470 }
 0x32e   :  { %v1379_v63 = vsel %vm383_vm2, %v2788_v62, 0.0  ;;  %v2473_v2 = vpop.eup %2472 }
 0x32f   :  { %v1214_v3 = vsel %vm383_vm2, %v2473_v2, 0.0 }
 0x331   :  { %v2793_v4 = vpop.eup %2474 }
 0x332   :  { %v1544_v5 = vsel %vm383_vm2, %v2793_v4, 0.0 }
 0x339   :  { %1219 = vrot.lane.b32.xlu0 %v2707_v44, %s2575_s2 }
 0x34c   :  { %719 = vadd.xlane.f32.xlu1 %v718_v59  ;;  %v2000_v59 = vld [vmem:[#allocation6 + $0x8] sm:$0xff]  }
 0x350   :  { %1050 = vadd.xlane.f32.xlu1 %v1049_v61 }
 0x354   :  { %1380 = vadd.xlane.f32.xlu1 %v1379_v63 }
 0x358   :  { %1215 = vadd.xlane.f32.xlu0 %v1214_v3 }
 0x35c   :  { %1545 = vadd.xlane.f32.xlu0 %v1544_v5  ;;  %v2003_v5 = vld [vmem:[#allocation6 + $0x20] sm:$0xff]  }
 0x365   :  { %1384 = vrot.lane.b32.xlu1 %v2707_v44, %s2576_s15 }
 0x372   :  { %1549 = vrot.lane.b32.xlu0 %v2707_v44, %s2578_s17 }
 0x3a4   :  { %v392_v8 = vpop.xlane.xlu1 %391 }
 0x3a5   :  { %2476 = vrcp.f32 %v392_v8 }
 0x3a8   :  { %v554_v9 = vpop.xlane.xlu0 %553  ;;  %v1055_v44 = vpop.permute.xlu1 %1054 }
 0x3a9   :  { %2478 = vrcp.f32 %v554_v9 }
 0x3af   :  { %v2477_v10 = vpop.eup %2476 }
 0x3b0   :  { %v394_v11 = vmul.f32 %v2477_v10, %v2461_v35  ;;  %v885_v14 = vpop.xlane.xlu0 %884 }
 0x3b2   :  { %2134 = vmatmul.mubr.msk.f32.vlgmr.msra.gmra.mrb[2].mxu1 %vm383_vm2, %v394_v11 }
 0x3b3   :  { %v2479_v12 = vpop.eup %2478  ;;  %2142 = vmatpush3.msra.mxu1 %v2774_v21  ;;  %2143 = vmatprep.mubr.msk.f32.mxu1 %vm2573_vm0, %v2572_v1 }
 0x3b4   :  { %v556_v13 = vmul.f32 %v2479_v12, %v2463_v37  ;;  %2151 = vmatprep.subr.mxu1 %v2572_v1  ;;  %v1220_v17 = vpop.permute.xlu0 %1219 }
 0x3b6   :  { %2144 = vmatmul.mubr.msk.f32.vlgmr.msra.gmra.mrb[4].mxu1 %vm383_vm2, %v556_v13 }
 0x3b7   :  { %2152 = vmatpush3.msra.mxu1 %v724_v7  ;;  %2153 = vmatprep.mubr.msk.f32.mxu1 %vm2573_vm0, %v2572_v1  ;;  %v2005_v7 = vld [vmem:[#allocation6 + $0x30] sm:$0xff]  }
 0x3b8   :  { %2161 = vmatprep.subr.mxu1 %v2572_v1 }
 0x3d9   :  { %v720_v15 = vpop.xlane.xlu1 %719 }
 0x3da   :  { %2480 = vrcp.f32 %v720_v15 }
 0x3db   :  { %2482 = vrcp.f32 %v885_v14 }
 0x3dd   :  { %v1051_v16 = vpop.xlane.xlu1 %1050 }
 0x3de   :  { %2484 = vrcp.f32 %v1051_v16 }
 0x3e1   :  { %v1381_v20 = vpop.xlane.xlu1 %1380 }
 0x3e4   :  { %v2481_v18 = vpop.eup %2480 }
 0x3e5   :  { %v722_v19 = vmul.f32 %v2481_v18, %v2467_v57  ;;  %v1216_v21 = vpop.xlane.xlu0 %1215  ;;  %v2483_v22 = vpop.eup %2482 }
 0x3e6   :  { %2486 = vrcp.f32 %v1216_v21  ;;  %v887_v23 = vmul.f32 %v2483_v22, %v2778_v41  ;;  %v1385_v34 = vpop.permute.xlu1 %1384  ;;  %v1993_v41 = vld [vmem:[#allocation4 + $0x8] sm:$0xff]   ;;  %v2006_v21 = vld [vmem:[#allocation6 + $0x38] sm:$0xff]   ;;  %v1666_v22 = vld [vmem:[%s2868_s4] sm:$0x7] }
 0x3e7   :  { %2154 = vmatmul.mubr.msk.f32.vlgmr.msra.gmra.mrb[6].mxu1 %vm383_vm2, %v722_v19  ;;  %2488 = vrcp.f32 %v1381_v20  ;;  %2337 = vmatpush3.bf16.msra.mxu0 %v1993_v41  ;;  %v1891_v40 = vrot.slane %v1666_v22, %v153_v31 }
 0x3e8   :  { %2162 = vmatpush3.msra.mxu1 %v889_v6  ;;  %2163 = vmatprep.mubr.msk.f32.mxu1 %vm2573_vm0, %v2572_v1  ;;  %v2485_v26 = vpop.eup %2484  ;;  %v2004_v6 = vld [vmem:[#allocation6 + $0x28] sm:$0xff]  }
 0x3e9   :  { %v1546_v24 = vpop.xlane.xlu0 %1545  ;;  %2171 = vmatprep.subr.mxu1 %v2572_v1  ;;  %v1053_v27 = vmul.f32 %v2485_v26, %v2469_v60  ;;  %2338 = vmatprep.subr.bf16.mxu0 %v2571_v0 }
 0x3ea   :  { %2490 = vrcp.f32 %v1546_v24 }
 0x3eb   :  { %2164 = vmatmul.mubr.msk.f32.vlgmr.msra.gmra.mrb[8].mxu1 %vm383_vm2, %v887_v23  ;;  %2340 = vmatpush3.bf16.msra.mxu0 %v1994_v42  ;;  %v1702_v23 = vrot.slane %v1666_v22, %v149_v29  ;;  %v1896_v29 = vrot.slane %v1666_v22, %v157_v39 }
 0x3ec   :  { %2172 = vmatpush3.msra.mxu1 %v1055_v44  ;;  %2173 = vmatprep.mubr.msk.f32.mxu1 %vm2573_vm0, %v2572_v1 }
 0x3ed   :  { %2181 = vmatprep.subr.mxu1 %v2572_v1  ;;  %v1550_v38 = vpop.permute.xlu0 %1549  ;;  %2341 = vmatprep.subr.bf16.mxu0 %v2571_v0 }
 0x3ef   :  { %2174 = vmatmul.mubr.msk.f32.vlgmr.msra.gmra.mrb[10].mxu1 %vm383_vm2, %v1053_v27  ;;  %2343 = vmatpush3.bf16.msra.mxu0 %v1995_v47 }
 0x3f0   :  { %v2487_v30 = vpop.eup %2486  ;;  %2182 = vmatpush3.msra.mxu1 %v1220_v17  ;;  %2183 = vmatprep.mubr.msk.f32.mxu1 %vm2573_vm0, %v2572_v1 }
 0x3f1   :  { %v1218_v32 = vmul.f32 %v2487_v30, %v2473_v2  ;;  %2191 = vmatprep.subr.mxu1 %v2572_v1  ;;  %v2489_v33 = vpop.eup %2488  ;;  %2344 = vmatprep.subr.bf16.mxu0 %v2571_v0  ;;  %v2002_v2 = vld [vmem:[#allocation6 + $0x18] sm:$0xff]  }
 0x3f2   :  { %v1383_v35 = vmul.f32 %v2489_v33, %v2788_v62 }
 0x3f3   :  { %2184 = vmatmul.mubr.msk.f32.vlgmr.msra.gmra.mrb[12].mxu1 %vm383_vm2, %v1218_v32  ;;  %2346 = vmatpush3.bf16.msra.mxu0 %v1996_v48 }
 0x3f4   :  { %2192 = vmatpush3.msra.mxu1 %v1385_v34  ;;  %2193 = vmatprep.mubr.msk.f32.mxu1 %vm2573_vm0, %v2572_v1  ;;  %v2491_v36 = vpop.eup %2490 }
 0x3f5   :  { %2201 = vmatprep.subr.mxu1 %v2572_v1  ;;  %v1548_v37 = vmul.f32 %v2491_v36, %v2793_v4  ;;  %2347 = vmatprep.subr.bf16.mxu0 %v2571_v0 }
 0x3f7   :  { %2194 = vmatmul.mubr.msk.f32.vlgmr.msra.gmra.mrb[14].mxu1 %vm383_vm2, %v1383_v35  ;;  %2349 = vmatpush3.bf16.msra.mxu0 %v1997_v49 }
 0x3f8   :  { %2202 = vmatpush3.msra.mxu1 %v1550_v38  ;;  %2203 = vmatprep.mubr.msk.f32.mxu1 %vm2573_vm0, %v2572_v1 }
 0x3f9   :  { %2350 = vmatprep.subr.bf16.mxu0 %v2571_v0  ;;  %2357 = vmatprep.subr.bf16.mxu1 %v1962_v58 }
 0x3fb   :  { %2204 = vmatmul.mubr.msk.f32.vlgmr.msra.gmra.mrb[16].mxu1 %vm383_vm2, %v1548_v37  ;;  %2352 = vmatpush3.bf16.msra.mxu0 %v1998_v51 }
 0x3fc   :  { %2353 = vmatprep.subr.bf16.mxu0 %v2571_v0  ;;  %2359 = vmatpush3.bf16.msra.mxu1 %v1962_v58  ;;  %v2001_v0 = vld [vmem:[#allocation6 + $0x10] sm:$0xff]  }
 0x3fd   :  { %2361 = vmatprep.subr.bf16.mxu1 %v2000_v59 }
 0x3ff   :  { %2355 = vmatpush3.bf16.msra.mxu0 %v1999_v54 }
 0x400   :  { %2363 = vmatpush3.bf16.msra.mxu1 %v2000_v59 }
 0x401   :  { %2365 = vmatprep.subr.bf16.mxu1 %v2001_v0 }
 0x404   :  { %2367 = vmatpush3.bf16.msra.mxu1 %v2001_v0 }
 0x405   :  { %2369 = vmatprep.subr.bf16.mxu1 %v2002_v2 }
 0x408   :  { %2371 = vmatpush3.bf16.msra.mxu1 %v2002_v2 }
 0x409   :  { %2373 = vmatprep.subr.bf16.mxu1 %v2003_v5 }
 0x40c   :  { %2375 = vmatpush3.bf16.msra.mxu1 %v2003_v5 }
 0x40d   :  { %2377 = vmatprep.subr.bf16.mxu1 %v2004_v6 }
 0x410   :  { %2379 = vmatpush3.bf16.msra.mxu1 %v2004_v6 }
 0x411   :  { %2381 = vmatprep.subr.bf16.mxu1 %v2005_v7 }
 0x414   :  { %2383 = vmatpush3.bf16.msra.mxu1 %v2005_v7 }
 0x415   :  { %2385 = vmatprep.subr.bf16.mxu1 %v2006_v21 }
 0x418   :  { %2387 = vmatpush3.bf16.msra.mxu1 %v2006_v21 }
 0x485   :  { %v2835_v43 = vpop.f32.mrb[2].mxu1 }
 0x486   :  { %v2135_v45 = vpop.f32.mrb[3].mxu1 }
 0x489   :  { %v630_v1 = vpop.f32.mrb[4].mxu1 }
 0x48a   :  { %1626 = vrot.lane.b32.xlu1 %v630_v1, %s2578_s17  ;;  %v2145_v46 = vpop.f32.mrb[5].mxu1 }
 0x4ba   :  { %v795_v50 = vpop.f32.mrb[6].mxu1 }
 0x4bb   :  { %1630 = vrot.lane.b32.xlu0 %v795_v50, %s2576_s15  ;;  %v2155_v52 = vpop.f32.mrb[7].mxu1 }
 0x4be   :  { %v960_v53 = vpop.f32.mrb[8].mxu1 }
 0x4bf   :  { %1634 = vrot.lane.b32.xlu1 %v960_v53, %s2575_s2  ;;  %v2165_v55 = vpop.f32.mrb[9].mxu1 }
 0x4c2   :  { %v1126_v56 = vpop.f32.mrb[10].mxu1 }
 0x4c3   :  { %1638 = vrot.lane.b32.xlu0 %v1126_v56, %s2565_s7  ;;  %v2175_v57 = vpop.f32.mrb[11].mxu1 }
 0x4c6   :  { %v1291_v60 = vpop.f32.mrb[12].mxu1 }
 0x4c7   :  { %1642 = vrot.lane.b32.xlu1 %v1291_v60, %s2579_s18  ;;  %v2185_v61 = vpop.f32.mrb[13].mxu1 }
 0x4ca   :  { %v1456_v62 = vpop.f32.mrb[14].mxu1 }
 0x4cb   :  { %1646 = vrot.lane.b32.xlu0 %v1456_v62, %s2577_s16  ;;  %v2195_v63 = vpop.f32.mrb[15].mxu1 }
 0x4ce   :  { %v1621_v3 = vpop.f32.mrb[16].mxu1 }
 0x4cf   :  { %1650 = vrot.lane.b32.xlu1 %v1621_v3, %s2574_s14  ;;  %v2205_v4 = vpop.f32.mrb[17].mxu1 }
 0x4fc   :  { %v1627_v8 = vpop.permute.xlu1 %1626 }
 0x4fd   :  { %v1653_v12 = vsel %vm307_vm1, %v2835_v43, %v1627_v8 }
 0x52d   :  { %v1631_v9 = vpop.permute.xlu0 %1630 }
 0x52e   :  { %v1655_v13 = vsel %vm1654_vm3, %v1653_v12, %v1631_v9 }
 0x531   :  { %v1635_v10 = vpop.permute.xlu1 %1634 }
 0x532   :  { %v1657_v14 = vsel %vm1656_vm4, %v1655_v13, %v1635_v10 }
 0x535   :  { %v1639_v11 = vpop.permute.xlu0 %1638 }
 0x536   :  { %v1659_v16 = vsel %vm1658_vm5, %v1657_v14, %v1639_v11 }
 0x539   :  { %v1643_v44 = vpop.permute.xlu1 %1642 }
 0x53a   :  { %v1661_v17 = vsel %vm1660_vm6, %v1659_v16, %v1643_v44 }
 0x53d   :  { %v1647_v15 = vpop.permute.xlu0 %1646 }
 0x53e   :  { %v1663_v18 = vsel %vm1662_vm7, %v1661_v17, %v1647_v15 }
 0x541   :  { %v1651_v19 = vpop.permute.xlu1 %1650 }
 0x542   :  { %v1665_v20 = vsel %vm1664_vm8, %v1663_v18, %v1651_v19 }
 0x543   :  { %2239 = vmatmul.mubr.f32.vlgmr.msra.gmra.mrb[18].mxu0 %v1665_v20 }
 0x616   :  { %v1769_v24 = vpop.f32.mrb[18].mxu0 }
 0x617   :  { %v1770_v26 = vadd.f32 %v1769_v24, %v1702_v23  ;;  %v2240_v27 = vpop.f32.mrb[19].mxu0 }
 0x619   :  { %v1773_v30 = vadd.f32 %v1770_v26, %v2669_v25 }
 0x61b   :  { %v1806_v32 = vmul.f32 %v1773_v30, %v1773_v30  ;;  %2273 = vmatprep.mubr.f32.mxu1 %v1773_v30 }
 0x61d   :  { %2274 = vmatmul.mubr.f32.vlgmr.msra.gmra.mrb[18].mxu1 %v1806_v32 }
 0x6f0   :  { %v2275_v33 = vpop.f32.mrb[18].mxu1 }
 0x6f1   :  { %v1873_v34 = vpop.f32.mrb[19].mxu1 }
 0x6f2   :  { %v1882_v35 = vmul.f32 %v1873_v34, %v1873_v34  ;;  %v1884_v37 = vsub.f32 %v1773_v30, %v1873_v34 }
 0x6f4   :  { %v1883_v36 = vsub.f32 %v2275_v33, %v1882_v35 }
 0x6f6   :  { %v1885_v38 = vadd.f32 1e-05, %v1883_v36 }
 0x6f8   :  { %2492 = vrsqrt.f32 %v1885_v38 }
 0x702   :  { %v2493_v41 = vpop.eup %2492 }
 0x703   :  { %v1887_v42 = vmul.f32 %v2493_v41, %v1884_v37 }
 0x705   :  { %v1892_v43 = vmul.f32 %v1891_v40, %v1887_v42 }
 0x707   :  { %v1897_v25 = vadd.f32 %v1896_v29, %v1892_v43 }
 0x709   :  { %1898 = vst [vmem:[%s2870_s6] sm:$0xff] %v1897_v25 }
 0x70a   :  { %1903 = vsyncpa [#allocation3], 1 }
 0x70b   :  { %1904 = vsyncpa [#allocation5], 1 }

</bundles_post_ra>
